<compile_context>
chip_gen: v5e
topology: v5e:2x2
jax: 0.10.0
libtpu: 0.0.40
codegen_flags: <defaults>
</compile_context>

<pallas_src>
import functools
from typing import NamedTuple

import jax
import jax.numpy as jnp
from jax import lax
from jax.experimental import pallas as pl
from jax.experimental.pallas import tpu as pltpu


def _round_up(x: int, m: int) -> int:
    return ((x + m - 1) // m) * m


class ActorParams(NamedTuple):
    mode: str          # "pinned" (W1 fully VMEM-resident) or "ktiled" (grid over R)
    w1: jax.Array      # bf16, (R, HP) or (RP, HP)
    b1: jax.Array      # f32,  (1, HP)
    w2: jax.Array      # bf16, (HP, AP)
    b2: jax.Array      # f32,  (1, AP)
    repr_dim: int
    hidden_dim: int
    action_dim: int
    hp: int
    ap: int
    block_r: int


def prepare_actor_params(w1, b1, w2, b2, *,
                         pinned_w1_budget_bytes: int = 16 * 1024 * 1024,
                         block_r: int = 512,
                         force_mode: str | None = None) -> ActorParams:
    """Hoisted, one-time parameter prep: bf16 cast + lane-padding + tiling decision.

    Zero padding is exact: padded W1 cols / b1 entries give ReLU(0)=0 hidden units,
    and padded W2 rows/cols are zero, so padded lanes contribute nothing to mu.
    """
    R, H = w1.shape
    A = w2.shape[1]
    HP = _round_up(H, 128)
    AP = _round_up(A, 128)

    b1 = jnp.reshape(b1, (1, -1))
    b2 = jnp.reshape(b2, (1, -1))

    b1_p = jnp.zeros((1, HP), jnp.float32).at[:, :H].set(b1.astype(jnp.float32))
    w2_p = jnp.zeros((HP, AP), jnp.bfloat16).at[:H, :A].set(w2.astype(jnp.bfloat16))
    b2_p = jnp.zeros((1, AP), jnp.float32).at[:, :A].set(b2.astype(jnp.float32))

    mode = "pinned" if R * HP * 2 <= pinned_w1_budget_bytes else "ktiled"
    if force_mode is not None:
        mode = force_mode

    if mode == "pinned":
        w1_p = jnp.zeros((R, HP), jnp.bfloat16).at[:, :H].set(w1.astype(jnp.bfloat16))
    else:
        RP = _round_up(R, block_r)
        w1_p = jnp.zeros((RP, HP), jnp.bfloat16).at[:R, :H].set(w1.astype(jnp.bfloat16))

    return ActorParams(mode, w1_p, b1_p, w2_p, b2_p, R, H, A, HP, AP, block_r)


# ----------------------------------------------------------------------------- kernels


def _actor_kernel_pinned(obs_ref, w1_ref, b1_ref, w2_ref, b2_ref, mu_ref):
    # hidden = relu(obs @ W1 + b1)  -- bf16 operands, f32 accumulation on the MXU.
    h = jnp.dot(obs_ref[...], w1_ref[...], preferred_element_type=jnp.float32)
    h = jnp.maximum(h + b1_ref[...], 0.0)                    # (TB, HP) + (1, HP), f32 VPU
    # mu = hidden @ W2 + b2
    mu = jnp.dot(h.astype(w2_ref.dtype), w2_ref[...],
                 preferred_element_type=jnp.float32)
    mu_ref[...] = (mu + b2_ref[...]).astype(mu_ref.dtype)    # lane-dense (TB, AP) store


def _actor_kernel_ktiled(obs_ref, w1_ref, b1_ref, w2_ref, b2_ref, mu_ref, h_acc,
                         *, r_total, block_r, needs_mask):
    k = pl.program_id(1)

    @pl.when(k == 0)
    def _():
        h_acc[...] = jnp.zeros_like(h_acc)

    obs_blk = obs_ref[...]
    if needs_mask:
        # Ragged last R-block: zero the out-of-bounds obs columns (W1's padded rows
        # are already exact zeros), so garbage (possibly NaN) never enters the MXU.
        col = lax.broadcasted_iota(jnp.int32, obs_blk.shape, 1) + k * block_r
        obs_blk = jnp.where(col < r_total, obs_blk, jnp.zeros_like(obs_blk))

    h_acc[...] += jnp.dot(obs_blk, w1_ref[...], preferred_element_type=jnp.float32)

    @pl.when(k == pl.num_programs(1) - 1)
    def _():
        h = jnp.maximum(h_acc[...] + b1_ref[...], 0.0)
        mu = jnp.dot(h.astype(w2_ref.dtype), w2_ref[...],
                     preferred_element_type=jnp.float32)
        mu_ref[...] = (mu + b2_ref[...]).astype(mu_ref.dtype)


# ----------------------------------------------------------------------------- wrapper


def actor_forward(obs, std_scalar, params: ActorParams, *,
                  block_b: int = 512, use_pallas=None):
    """Returns (mu, std) — the parameters of TruncatedNormal(mu, std)."""
    B, R = obs.shape
    assert R == params.repr_dim
    A, HP, AP = params.action_dim, params.hp, params.ap

    if use_pallas is None:
        # Tiny calls: pallas_call fixed cost dominates; a fused XLA dot is faster.
        use_pallas = B >= 64

    if not use_pallas:
        obs_bf = obs.astype(jnp.bfloat16)
        w1 = params.w1[:R] if params.mode == "ktiled" else params.w1
        h = jnp.maximum(
            jnp.dot(obs_bf, w1, preferred_element_type=jnp.float32) + params.b1, 0.0)
        mu = jnp.dot(h.astype(jnp.bfloat16), params.w2,
                     preferred_element_type=jnp.float32) + params.b2
        mu = mu[:, :A]
        std = jnp.full((B, A), std_scalar, dtype=jnp.float32)
        return mu, std

    obs_bf = obs.astype(jnp.bfloat16)   # no padded copy; ragged last block handled by Pallas

    # Batch tile: multiple of 16 (bf16 sublane packing), big by default; give the
    # v7x megacore at least 2 grid steps on the "parallel" axis when B allows it.
    TB = min(block_b, _round_up(B, 16))
    if B >= 32 and pl.cdiv(B, TB) < 2:
        TB = _round_up(pl.cdiv(B, 2), 16)

    cparams = pltpu.CompilerParams(
        dimension_semantics=(("parallel",) if params.mode == "pinned"
                             else ("parallel", "arbitrary")),
        vmem_limit_bytes=64 * 1024 * 1024,
    )

    common_bytes = (obs_bf.size * 2 + params.w1.size * 2 + params.w2.size * 2
                    + params.b1.size * 4 + params.b2.size * 4 + B * AP * 4)

    if params.mode == "pinned":
        cost = pl.CostEstimate(flops=2 * B * (R * HP + HP * AP),
                               transcendentals=0, bytes_accessed=common_bytes)
        mu_padded = pl.pallas_call(
            _actor_kernel_pinned,
            out_shape=jax.ShapeDtypeStruct((B, AP), jnp.float32),
            grid_spec=pltpu.PrefetchScalarGridSpec(
                num_scalar_prefetch=0,
                grid=(pl.cdiv(B, TB),),
                in_specs=[
                    pl.BlockSpec((TB, R), lambda i: (i, 0)),    # obs  (batch-tiled)
                    pl.BlockSpec((R, HP), lambda i: (0, 0)),    # W1   (pinned)
                    pl.BlockSpec((1, HP), lambda i: (0, 0)),    # b1   (pinned)
                    pl.BlockSpec((HP, AP), lambda i: (0, 0)),   # W2   (pinned)
                    pl.BlockSpec((1, AP), lambda i: (0, 0)),    # b2   (pinned)
                ],
                out_specs=pl.BlockSpec((TB, AP), lambda i: (i, 0)),
            ),
            compiler_params=cparams,
            cost_estimate=cost,
        )(obs_bf, params.w1, params.b1, params.w2, params.b2)
    else:
        RP = params.w1.shape[0]
        TR = params.block_r
        nk = RP // TR
        kernel = functools.partial(_actor_kernel_ktiled, r_total=R, block_r=TR,
                                   needs_mask=(RP != R))
        cost = pl.CostEstimate(flops=2 * B * (RP * HP + HP * AP),
                               transcendentals=0, bytes_accessed=common_bytes)
        mu_padded = pl.pallas_call(
            kernel,
            out_shape=jax.ShapeDtypeStruct((B, AP), jnp.float32),
            grid_spec=pltpu.PrefetchScalarGridSpec(
                num_scalar_prefetch=0,
                grid=(pl.cdiv(B, TB), nk),
                in_specs=[
                    pl.BlockSpec((TB, TR), lambda i, k: (i, k)),   # obs   (B x R tiled)
                    pl.BlockSpec((TR, HP), lambda i, k: (k, 0)),   # W1    (R tiled)
                    pl.BlockSpec((1, HP), lambda i, k: (0, 0)),    # b1    (pinned)
                    pl.BlockSpec((HP, AP), lambda i, k: (0, 0)),   # W2    (pinned)
                    pl.BlockSpec((1, AP), lambda i, k: (0, 0)),    # b2    (pinned)
                ],
                out_specs=pl.BlockSpec((TB, AP), lambda i, k: (i, 0)),
                scratch_shapes=[pltpu.VMEM((TB, HP), jnp.float32)],
            ),
            compiler_params=cparams,
            cost_estimate=cost,
        )(obs_bf, params.w1, params.b1, params.w2, params.b2)

    mu = mu_padded[:, :A]
    # std broadcast is free in XLA — no reason to burn HBM writeback on a constant.
    std = jnp.full((B, A), std_scalar, dtype=jnp.float32)
    return mu, std


# ----------------------------------------------------------------------------- test


if __name__ == "__main__":
    # Small shapes consistent with the module.
    B, REPR_DIM, HIDDEN, ACTION, STD = 8, 32, 32, 6, 0.2

    key = jax.random.PRNGKey(0)
    k_obs, k_w1, k_b1, k_w2, k_b2 = jax.random.split(key, 5)

    obs = jax.random.normal(k_obs, (B, REPR_DIM), dtype=jnp.float32)
    # Deterministic synthetic parameters (stand-in for utils.weight_init).
    w1 = jax.random.normal(k_w1, (REPR_DIM, HIDDEN), dtype=jnp.float32) * 0.1
    b1 = jax.random.normal(k_b1, (HIDDEN,), dtype=jnp.float32) * 0.01
    w2 = jax.random.normal(k_w2, (HIDDEN, ACTION), dtype=jnp.float32) * 0.1
    b2 = jax.random.normal(k_b2, (ACTION,), dtype=jnp.float32) * 0.01

    # Hoisted weight prep: runs once, reused by every forward call.
    params = prepare_actor_params(w1, b1, w2, b2)
    assert params.mode == "pinned"

    # Force the Pallas path (auto-dispatch would pick the XLA fallback at this size).
    mu, std = actor_forward(obs, STD, params, use_pallas=True)
    jax.block_until_ready((mu, std))

    def ref_mu(o, w1_, b1_, w2_, b2_):
        h = jnp.maximum(
            jnp.dot(o.astype(jnp.bfloat16), w1_.astype(jnp.bfloat16),
                    preferred_element_type=jnp.float32) + b1_[None, :], 0.0)
        return jnp.dot(h.astype(jnp.bfloat16), w2_.astype(jnp.bfloat16),
                       preferred_element_type=jnp.float32) + b2_[None, :]

    mu_bf_ref = ref_mu(obs, w1, b1, w2, b2)
    mu_f32 = jnp.maximum(obs @ w1 + b1[None, :], 0.0) @ w2 + b2[None, :]
    assert mu.shape == (B, ACTION) and std.shape == (B, ACTION)
    assert jnp.allclose(mu, mu_bf_ref, atol=1e-3, rtol=1e-3), "mu mismatch (bf16 ref)"
    assert jnp.allclose(mu, mu_f32, atol=5e-2), "mu mismatch (f32 ref)"
    assert jnp.allclose(std, jnp.full((B, ACTION), STD), atol=1e-6), "std mismatch"

    # XLA fallback (auto-dispatch at tiny batch) matches the kernel.
    mu_xla, _ = actor_forward(obs, STD, params)
    assert jnp.allclose(mu, mu_xla, atol=1e-3, rtol=1e-3), "fallback mismatch"

    # Exercise the K-tiled path (used when repr_dim makes W1 too big to pin in VMEM)
    # at small shapes: ragged batch (24) and ragged contraction dim (160 over 128).
    B2, R2, H2, A2 = 24, 160, 32, 6
    kk = jax.random.split(jax.random.PRNGKey(1), 5)
    obs2 = jax.random.normal(kk[0], (B2, R2), dtype=jnp.float32)
    w1_2 = jax.random.normal(kk[1], (R2, H2), dtype=jnp.float32) * 0.05
    b1_2 = jax.random.normal(kk[2], (H2,), dtype=jnp.float32) * 0.01
    w2_2 = jax.random.normal(kk[3], (H2, A2), dtype=jnp.float32) * 0.05
    b2_2 = jax.random.normal(kk[4], (A2,), dtype=jnp.float32) * 0.01
    params2 = prepare_actor_params(w1_2, b1_2, w2_2, b2_2, block_r=128,
                                   force_mode="ktiled")
    mu2, std2 = actor_forward(obs2, STD, params2, use_pallas=True)
    jax.block_until_ready((mu2, std2))
    mu2_ref = ref_mu(obs2, w1_2, b1_2, w2_2, b2_2)
    assert mu2.shape == (B2, A2)
    assert jnp.allclose(mu2, mu2_ref, atol=2e-2, rtol=2e-2), "K-tiled mu mismatch"

    # TODO(synk): TruncatedNormal sampling/log_prob is a distribution object, not a
    # tensor op in forward(); the kernel returns its parameters (mu, std).

    print("KERNEL_OK")
</pallas_src>

<mosaic_0001>
module attributes {stable_mosaic.version = 11 : i64} {
  func.func @_actor_kernel_pinned(%arg0: i32, %arg1: memref<16x32xbf16, #tpu.memory_space<vmem>>, %arg2: memref<32x128xbf16, #tpu.memory_space<vmem>>, %arg3: memref<1x128xf32, #tpu.memory_space<vmem>>, %arg4: memref<128x128xbf16, #tpu.memory_space<vmem>>, %arg5: memref<1x128xf32, #tpu.memory_space<vmem>>, %arg6: memref<16x128xf32, #tpu.memory_space<vmem>>) attributes {dimension_semantics = [#tpu.dimension_semantics<parallel>], iteration_bounds = array<i64: 1>, scalar_prefetch = 0 : i64, scratch_operands = 0 : i64, tpu.core_type = #tpu.core_type<tc>, window_params = [{transform_indices = @transform_0, window_bounds = array<i64: 16, 32>}, {pipeline_mode = #tpu.pipeline_mode<synchronous>, transform_indices = @transform_1, window_bounds = array<i64: 32, 128>}, {pipeline_mode = #tpu.pipeline_mode<synchronous>, transform_indices = @transform_2, window_bounds = array<i64: 1, 128>}, {pipeline_mode = #tpu.pipeline_mode<synchronous>, transform_indices = @transform_3, window_bounds = array<i64: 128, 128>}, {pipeline_mode = #tpu.pipeline_mode<synchronous>, transform_indices = @transform_4, window_bounds = array<i64: 1, 128>}, {transform_indices = @transform_5, window_bounds = array<i64: 16, 128>}]} {
    %c0 = arith.constant 0 : index
    %c0_0 = arith.constant 0 : index
    %0 = vector.load %arg1[%c0, %c0_0] : memref<16x32xbf16, #tpu.memory_space<vmem>>, vector<16x32xbf16>
    %c0_1 = arith.constant 0 : index
    %c0_2 = arith.constant 0 : index
    %1 = vector.load %arg2[%c0_1, %c0_2] : memref<32x128xbf16, #tpu.memory_space<vmem>>, vector<32x128xbf16>
    %cst = arith.constant dense<0.000000e+00> : vector<16x128xf32>
    %2 = tpu.matmul %0, %1, %cst {dimension_numbers = #tpu.dot_dimension_numbers<[1], [0], [0], [1], [0, 0, 1, 1], [], []>} : vector<16x32xbf16>, vector<32x128xbf16>, vector<16x128xf32> -> vector<16x128xf32>
    %c0_3 = arith.constant 0 : index
    %c0_4 = arith.constant 0 : index
    %3 = vector.load %arg3[%c0_3, %c0_4] : memref<1x128xf32, #tpu.memory_space<vmem>>, vector<1x128xf32>
    %4 = vector.broadcast %3 : vector<1x128xf32> to vector<16x128xf32>
    %5 = arith.addf %2, %4 : vector<16x128xf32>
    %cst_5 = arith.constant 0.000000e+00 : f32
    %6 = vector.broadcast %cst_5 : f32 to vector<16x128xf32>
    %7 = arith.maximumf %5, %6 : vector<16x128xf32>
    %8 = arith.truncf %7 : vector<16x128xf32> to vector<16x128xbf16>
    %c0_6 = arith.constant 0 : index
    %c0_7 = arith.constant 0 : index
    %9 = vector.load %arg4[%c0_6, %c0_7] : memref<128x128xbf16, #tpu.memory_space<vmem>>, vector<128x128xbf16>
    %cst_8 = arith.constant dense<0.000000e+00> : vector<16x128xf32>
    %10 = tpu.matmul %8, %9, %cst_8 {dimension_numbers = #tpu.dot_dimension_numbers<[1], [0], [0], [1], [0, 0, 1, 1], [], []>} : vector<16x128xbf16>, vector<128x128xbf16>, vector<16x128xf32> -> vector<16x128xf32>
    %c0_9 = arith.constant 0 : index
    %c0_10 = arith.constant 0 : index
    %11 = vector.load %arg5[%c0_9, %c0_10] : memref<1x128xf32, #tpu.memory_space<vmem>>, vector<1x128xf32>
    %12 = vector.broadcast %11 : vector<1x128xf32> to vector<16x128xf32>
    %13 = arith.addf %10, %12 : vector<16x128xf32>
    %c0_11 = arith.constant 0 : index
    %c0_12 = arith.constant 0 : index
    %14 = vector.load %arg6[%c0_11, %c0_12] : memref<16x128xf32, #tpu.memory_space<vmem>>, vector<16x128xf32>
    tpu.vector_store %arg6[%c0_11, %c0_12], %13 {strides = array<i32>} : memref<16x128xf32, #tpu.memory_space<vmem>>, vector<16x128xf32>,
    return
  }
  func.func @transform_0(%arg0: i32) -> (i32, i32) {
    %c0_i32 = arith.constant 0 : i32
    %c0_i32_0 = arith.constant 0 : i32
    return %arg0, %c0_i32 : i32, i32
  }
  func.func @transform_1(%arg0: i32) -> (i32, i32) {
    %c0_i32 = arith.constant 0 : i32
    %c0_i32_0 = arith.constant 0 : i32
    %c0_i32_1 = arith.constant 0 : i32
    return %c0_i32, %c0_i32_0 : i32, i32
  }
  func.func @transform_2(%arg0: i32) -> (i32, i32) {
    %c0_i32 = arith.constant 0 : i32
    %c0_i32_0 = arith.constant 0 : i32
    %c0_i32_1 = arith.constant 0 : i32
    return %c0_i32, %c0_i32_0 : i32, i32
  }
  func.func @transform_3(%arg0: i32) -> (i32, i32) {
    %c0_i32 = arith.constant 0 : i32
    %c0_i32_0 = arith.constant 0 : i32
    %c0_i32_1 = arith.constant 0 : i32
    return %c0_i32, %c0_i32_0 : i32, i32
  }
  func.func @transform_4(%arg0: i32) -> (i32, i32) {
    %c0_i32 = arith.constant 0 : i32
    %c0_i32_0 = arith.constant 0 : i32
    %c0_i32_1 = arith.constant 0 : i32
    return %c0_i32, %c0_i32_0 : i32, i32
  }
  func.func @transform_5(%arg0: i32) -> (i32, i32) {
    %c0_i32 = arith.constant 0 : i32
    %c0_i32_0 = arith.constant 0 : i32
    return %arg0, %c0_i32 : i32, i32
  }
}

</mosaic_0001>

<bundles_post_ra>
// kernel: tpu_custom_call.1
= control target key start
LH: loop header
LB: loop body
LE: loop exit
PB: predicated region body
PF: predicated region fallthrough
CT: control target
= control target key end

     0   :  { %10 = vsyncpa [#allocation3], 0  ;;  %s445_s0 = inlined_call_operand.hbm [shape: bf16[8,32], index: 0, kind: input, shape index: {}]   ;;  %s446_s1 = inlined_call_operand.hbm [shape: bf16[32,128], index: 1, kind: input, shape index: {}]   ;;  %s447_s2 = inlined_call_operand.vmem [shape: f32[1,128], index: 2, kind: input, shape index: {}]   ;;  %s448_s3 = inlined_call_operand.hbm [shape: bf16[128,128], index: 3, kind: input, shape index: {}]   ;;  %s449_s4 = inlined_call_operand.vmem [shape: f32[1,128], index: 4, kind: input, shape index: {}]   ;;  %s450_s5 = inlined_call_operand.hbm [shape: f32[8,128], index: 5, kind: output, shape index: {}]  }
   0x1   :  { %11 = vsyncpa [#allocation6], 0 }
   0x2   :  { %12 = vsyncpa [#allocation4], 0 }
   0x3   :  { %16 = vsyncadd [#allocation3], 64  ;;  %s30_s20 = sshll.u32 %s446_s1, 4  ;;  %s389_s21 = smov [#allocation5]   ;;  %s31_s20 = int_to_ptr.hbm [resolvable:$true] %s30_s20 }
   0x4   :  { %s32_s22 = sshll.u32 %s389_s21, 4  ;;  %s17_s25 = sshll.u32 %s445_s0, 4  ;;  %s33_s22 = int_to_ptr.vmem [resolvable:$true] %s32_s22  ;;  %s18_s25 = int_to_ptr.hbm [resolvable:$true] %s17_s25 }
   0x5   :  { %s390_s26 = smov 64   ;;  %s391_s27 = smov 4  }
   0x6   :  { %38 = dma.hbm_to_vmem [thread:$0]  %s31_s20, 256, %s33_s22, [#allocation6], %s390_s26, %s390_s26, %s391_s27  }
   0x7   :  { %s392_s28 = smov [#allocation2]   ;;  %s45_s7 = sshll.u32 %s448_s3, 4  ;;  %s46_s7 = int_to_ptr.hbm [resolvable:$true] %s45_s7 }
   0x8   :  { %s19_s29 = sshll.u32 %s392_s28, 4  ;;  %s393_s1 = smov [#allocation7]   ;;  %s20_s29 = int_to_ptr.vmem [resolvable:$true] %s19_s29 }
   0x9   :  { %25 = dma.hbm_to_vmem [thread:$0]  %s18_s25, 64, %s20_s29, [#allocation3], %s390_s26, %s390_s26, %s391_s27  }
   0xa   :  { %s47_s8 = sshll.u32 %s393_s1, 4  ;;  %s48_s8 = int_to_ptr.vmem [resolvable:$true] %s47_s8 }
   0xb   :  { %53 = dma.hbm_to_vmem [thread:$0]  %s46_s7, 1024, %s48_s8, [#allocation6], %s390_s26, %s390_s26, %s391_s27  }
   0xc   :  { %383 = dma.done.wait [#allocation3], 128  }
   0xd   :  { %384 = vsyncadd [#allocation3], 4294967168 }
   0xe   :  { %385 = dma.done.wait [#allocation6], 1280  }
   0xf   :  { %386 = vsyncadd [#allocation6], 4294966016  ;;  %v268_v0 = vld [vmem:[#allocation5 + $0x8] sm:$0xff]  ;;  %v267_v2 = vld [vmem:[#allocation5] sm:$0xff]  ;;  %vm96_vm0 = vcmask 261120  }
  0x10   :  { %v276_v1 = vld [vmem:[#allocation7 + $0x38] sm:$0xff]  ;;  %106 = vmatpush.bf16.msra.mxu0 %v268_v0  ;;  %v275_v3 = vld [vmem:[#allocation7 + $0x30] sm:$0xff]  ;;  %v266_v4 = vld [vmem:[#allocation2] sm:$0xff] }
  0x11   :  { %185 = vmatpush.bf16.msra.mxu1 %v276_v1  ;;  %v274_v5 = vld [vmem:[#allocation7 + $0x28] sm:$0xff]  ;;  %v273_v6 = vld [vmem:[#allocation7 + $0x20] sm:$0xff]  ;;  %v272_v7 = vld [vmem:[#allocation7 + $0x18] sm:$0xff] }
  0x12   :  { %v271_v8 = vld [vmem:[#allocation7 + $0x10] sm:$0xff]  ;;  %v270_v9 = vld [vmem:[#allocation7 + $0x8] sm:$0xff]  ;;  %v269_v10 = vld [vmem:[#allocation7] sm:$0xff] }
  0x13   :  { %v285_v12 = vld [vmem:[%s447_s2] ss:$0 sm:$0xff] }
  0x14   :  { %107 = vmatpush.bf16.msra.mxu0 %v267_v2  ;;  %v286_v19 = vld [vmem:[%s449_s4] ss:$0 sm:$0xff] }
  0x15   :  { %186 = vmatpush.bf16.msra.mxu1 %v275_v3 }
  0x17   :  { %233 = vmatmul.msk.bf16.vlgmr.msra.gmra.mxu0 %vm96_vm0, %v266_v4 }
  0x19   :  { %187 = vmatpush.bf16.msra.mxu1 %v274_v5 }
  0x1d   :  { %188 = vmatpush.bf16.msra.mxu1 %v273_v6 }
  0x21   :  { %189 = vmatpush.bf16.msra.mxu1 %v272_v7 }
  0x25   :  { %190 = vmatpush.bf16.msra.mxu1 %v271_v8 }
  0x29   :  { %191 = vmatpush.bf16.msra.mxu1 %v270_v9 }
  0x2d   :  { %192 = vmatpush.bf16.msra.mxu1 %v269_v10 }
  0x94   :  { %v109_v11 = vpop.f32.mrf.mxu0 }
  0x95   :  { %v110_v13 = vadd.f32 %v285_v12, %v109_v11 }
  0x97   :  { %v114_v16 = vmax.f32 %v110_v13, 0.0 }
  0x9c   :  { %v111_v14 = vpop.f32.mrf.mxu0 }
  0x9d   :  { %v112_v15 = vadd.f32 %v285_v12, %v111_v14 }
  0x9f   :  { %v115_v17 = vmax.f32 %v112_v15, 0.0 }
  0xa1   :  { %v116_v18 = vpack.c.bf16 %v115_v17, %v114_v16 }
  0xa3   :  { %193 = vmatmul.bf16.vlgmr.msra.gmra.mxu1 %v116_v18 }
 0x120   :  { %v194_v20 = vpop.f32.mrf.mxu1 }
 0x121   :  { %v195_v21 = vadd.f32 %v286_v19, %v194_v20 }
 0x123   :  { %199 = vst [vmem:[#allocation8] sm:$0xff] %v195_v21 }
 0x128   :  { %v196_v22 = vpop.f32.mrf.mxu1 }
 0x129   :  { %v197_v23 = vadd.f32 %v286_v19, %v196_v22 }
 0x12b   :  { %200 = vst [vmem:[#allocation8 + $0x8] sm:$0xff] %v197_v23 }
 0x12c   :  { %204 = vsyncadd [#allocation4], 128  ;;  %s207_s12 = sshll.u32 %s450_s5, 4  ;;  %s394_s13 = smov [#allocation8]   ;;  %s208_s12 = int_to_ptr.hbm [resolvable:$true] %s207_s12 }
 0x12d   :  { %s205_s14 = sshll.u32 %s394_s13, 4  ;;  %s395_s15 = smov 128   ;;  %s206_s14 = int_to_ptr.vmem [resolvable:$true] %s205_s14 }
 0x12e   :  { %s396_s16 = smov 8  }
 0x12f   :  { %213 = dma.vmem_to_hbm [thread:$0]  %s206_s14, 128, %s208_s12, [#allocation4], %s395_s15, %s395_s15, %s396_s16  }
 0x130   :  { %387 = dma.done.wait [#allocation4], 256  }
 0x131   :  { %388 = vsyncadd [#allocation4], 4294967040 }
 0x132   :  { %218 = vsyncpa [#allocation3], 1 }
 0x133   :  { %219 = vsyncpa [#allocation6], 1 }
 0x134   :  { %220 = vsyncpa [#allocation4], 1 }

</bundles_post_ra>
